<compile_context>
chip_gen: v7x
topology: tpu7x:2x2x1
jax: 0.10.0
libtpu: 0.0.40
codegen_flags: <defaults>
</compile_context>

<pallas_src>
import math

import jax
import jax.numpy as jnp
from jax.experimental import pallas as pl
from jax.experimental.pallas import tpu as pltpu

_INV_SQRT2 = 0.7071067811865476  # 1/sqrt(2)


def _round_up(v, m):
    return ((v + m - 1) // m) * m


def _pick_hidden_chunk(hidden, max_chunk):
    """Largest multiple of 128 that divides `hidden` and is <= max_chunk, else `hidden`."""
    if hidden <= max_chunk or hidden % 128 != 0:
        return hidden
    c = (max_chunk // 128) * 128
    while c >= 128:
        if hidden % c == 0:
            return c
        c -= 128
    return hidden


def _mlp_kernel(x_ref, w1_ref, b1_ref, w2_ref, b2_ref, out_ref, acc_ref):
    # x_ref : (TB, IN)       input dtype (cast to bf16 in-kernel for the MXU)
    # w1_ref: (IN, TK)  bf16   b1_ref: (1, TK)  f32
    # w2_ref: (TK, OUT) bf16   b2_ref: (1, OUT) f32
    # out_ref:(TB, OUT)        acc_ref:(TB, OUT) f32 scratch (resident across k)
    k = pl.program_id(1)
    nk = pl.num_programs(1)

    @pl.when(k == 0)
    def _init():
        acc_ref[...] = jnp.zeros_like(acc_ref)

    # fc1 slice: bf16 x bf16 -> f32 accumulate on the MXU.
    x = x_ref[...].astype(jnp.bfloat16)
    h = jnp.dot(x, w1_ref[...], preferred_element_type=jnp.float32)
    h = h + b1_ref[...]

    # Exact GELU (torch.nn.GELU, approximate='none'), in f32:
    #   0.5 * h * (1 + erf(h / sqrt(2)))
    h = 0.5 * h * (1.0 + jax.lax.erf(h * _INV_SQRT2))

    # Dropout(p=0.0) / eval mode is the identity -> omitted.

    # fc2 partial contribution of this hidden chunk (bf16 MXU, f32 accumulate).
    acc_ref[...] += jnp.dot(h.astype(jnp.bfloat16), w2_ref[...],
                            preferred_element_type=jnp.float32)

    @pl.when(k == nk - 1)
    def _finalize():
        # Single lane-dense store of the whole output tile.
        out_ref[...] = (acc_ref[...] + b2_ref[...]).astype(out_ref.dtype)


def mlp_forward(x, w1, b1, w2, b2, *, block_tokens=512, block_hidden=2048):
    """Pallas equivalent of Mlp.forward (drop=0.0).

    x : [..., in_features]
    w1: [in_features, hidden], b1: [hidden]
    w2: [hidden, out_features], b2: [out_features]
    returns [..., out_features] in x.dtype
    """
    in_features, hidden = w1.shape
    hidden2, out_features = w2.shape
    assert hidden == hidden2
    assert x.shape[-1] == in_features

    lead = x.shape[:-1]
    out_dtype = x.dtype
    x2 = x.reshape(-1, in_features)
    n = x2.shape[0]

    # Token tile: multiple of 8 (sublane), capped at block_tokens, and chosen so the
    # "parallel" token axis has >= 2 steps whenever n allows (v7x megacore).
    if n > 8:
        tb = min(_round_up(block_tokens, 8), _round_up(pl.cdiv(n, 2), 8))
    else:
        tb = 8
    n_tok_tiles = pl.cdiv(n, tb)  # ragged last tile handled by Pallas (masked writes)

    # Hidden chunk for the reduction axis (bounds resident weight VMEM per step).
    tk = _pick_hidden_chunk(hidden, block_hidden)
    n_hid_tiles = hidden // tk

    # Weights in bf16 (native MXU dtype), biases in f32.
    w1b = w1.astype(jnp.bfloat16)
    w2b = w2.astype(jnp.bfloat16)
    b1f = b1.reshape(1, hidden).astype(jnp.float32)
    b2f = b2.reshape(1, out_features).astype(jnp.float32)

    flops = 2 * n * (in_features * hidden + hidden * out_features)
    bytes_accessed = int(
        x2.size * jnp.dtype(x2.dtype).itemsize
        + w1b.size * 2 + w2b.size * 2
        + b1f.size * 4 + b2f.size * 4
        + n * out_features * jnp.dtype(out_dtype).itemsize
    )
    cost = pl.CostEstimate(flops=int(flops), transcendentals=int(n * hidden),
                           bytes_accessed=bytes_accessed)

    out = pl.pallas_call(
        _mlp_kernel,
        out_shape=jax.ShapeDtypeStruct((n, out_features), out_dtype),
        grid=(n_tok_tiles, n_hid_tiles),
        in_specs=[
            pl.BlockSpec((tb, in_features), lambda i, k: (i, 0)),   # x tile (const over k)
            pl.BlockSpec((in_features, tk), lambda i, k: (0, k)),   # W1 chunk
            pl.BlockSpec((1, tk), lambda i, k: (0, k)),             # b1 chunk
            pl.BlockSpec((tk, out_features), lambda i, k: (k, 0)),  # W2 chunk
            pl.BlockSpec((1, out_features), lambda i, k: (0, 0)),   # b2
        ],
        out_specs=pl.BlockSpec((tb, out_features), lambda i, k: (i, 0)),
        scratch_shapes=[pltpu.VMEM((tb, out_features), jnp.float32)],
        compiler_params=pltpu.CompilerParams(
            dimension_semantics=("parallel", "arbitrary"),
            vmem_limit_bytes=64 * 1024 * 1024,
        ),
        cost_estimate=cost,
    )(x2, w1b, b1f, w2b, b2f)

    return out.reshape(*lead, out_features)


def _reference(x, w1, b1, w2, b2):
    # Precision-matched pure-JAX reference (bf16 matmul inputs, f32 accumulate/GELU).
    h = jnp.einsum("...i,ih->...h", x.astype(jnp.bfloat16), w1.astype(jnp.bfloat16),
                   preferred_element_type=jnp.float32) + b1.astype(jnp.float32)
    h = 0.5 * h * (1.0 + jax.lax.erf(h * _INV_SQRT2))
    y = jnp.einsum("...h,ho->...o", h.astype(jnp.bfloat16), w2.astype(jnp.bfloat16),
                   preferred_element_type=jnp.float32) + b2.astype(jnp.float32)
    return y.astype(x.dtype)


if __name__ == "__main__":
    key = jax.random.PRNGKey(0)
    B, S = 2, 8
    IN, HID, OUT = 128, 256, 128  # lane-aligned feature dims

    k1, k2, k3, k4, k5 = jax.random.split(key, 5)
    x = jax.random.normal(k1, (B, S, IN), dtype=jnp.float32)
    w1 = jax.random.normal(k2, (IN, HID), dtype=jnp.float32) * (1.0 / math.sqrt(IN))
    b1 = jax.random.normal(k3, (HID,), dtype=jnp.float32) * 0.01
    w2 = jax.random.normal(k4, (HID, OUT), dtype=jnp.float32) * (1.0 / math.sqrt(HID))
    b2 = jax.random.normal(k5, (OUT,), dtype=jnp.float32) * 0.01

    # block_hidden=128 exercises the 2-step hidden-reduction / accumulator path;
    # the 16 flattened tokens split into 2 parallel token tiles of 8.
    out = mlp_forward(x, w1, b1, w2, b2, block_hidden=128)
    out = jax.block_until_ready(out)

    ref = _reference(x, w1, b1, w2, b2)
    assert out.shape == (B, S, OUT)
    assert out.dtype == x.dtype
    assert jnp.allclose(out, ref, atol=1e-3, rtol=1e-3), "mismatch vs reference"

    print("KERNEL_OK")
</pallas_src>

<mosaic_0001>
module attributes {stable_mosaic.version = 11 : i64} {
  func.func @_mlp_kernel(%arg0: i32, %arg1: i32, %arg2: memref<8x128xf32, #tpu.memory_space<vmem>>, %arg3: memref<128x128xbf16, #tpu.memory_space<vmem>>, %arg4: memref<1x128xf32, #tpu.memory_space<vmem>>, %arg5: memref<128x128xbf16, #tpu.memory_space<vmem>>, %arg6: memref<1x128xf32, #tpu.memory_space<vmem>>, %arg7: memref<8x128xf32, #tpu.memory_space<vmem>>, %arg8: memref<8x128xf32, #tpu.memory_space<vmem>>) attributes {dimension_semantics = [#tpu.dimension_semantics<parallel>, #tpu.dimension_semantics<arbitrary>], iteration_bounds = array<i64: 2, 2>, scalar_prefetch = 0 : i64, scratch_operands = 1 : i64, tpu.core_type = #tpu.core_type<tc>, window_params = [{transform_indices = @transform_0, window_bounds = array<i64: 8, 128>}, {transform_indices = @transform_1, window_bounds = array<i64: 128, 128>}, {transform_indices = @transform_2, window_bounds = array<i64: 1, 128>}, {transform_indices = @transform_3, window_bounds = array<i64: 128, 128>}, {pipeline_mode = #tpu.pipeline_mode<synchronous>, transform_indices = @transform_4, window_bounds = array<i64: 1, 128>}, {transform_indices = @transform_5, window_bounds = array<i64: 8, 128>}]} {
    %c0_i32 = arith.constant 0 : i32
    %0 = arith.cmpi eq, %arg1, %c0_i32 : i32
    %1 = arith.extui %0 : i1 to i32
    %c0_i32_0 = arith.constant 0 : i32
    %2 = arith.cmpi ne, %1, %c0_i32_0 : i32
    scf.if %2 {
      %cst_17 = arith.constant 0.000000e+00 : f32
      %27 = vector.broadcast %cst_17 : f32 to vector<8x128xf32>
      %c0_18 = arith.constant 0 : index
      %c0_19 = arith.constant 0 : index
      %28 = vector.load %arg8[%c0_18, %c0_19] : memref<8x128xf32, #tpu.memory_space<vmem>>, vector<8x128xf32>
      tpu.vector_store %arg8[%c0_18, %c0_19], %27 {strides = array<i32>} : memref<8x128xf32, #tpu.memory_space<vmem>>, vector<8x128xf32>,
    } else {
    }
    %c0 = arith.constant 0 : index
    %c0_1 = arith.constant 0 : index
    %3 = vector.load %arg2[%c0, %c0_1] : memref<8x128xf32, #tpu.memory_space<vmem>>, vector<8x128xf32>
    %4 = arith.truncf %3 : vector<8x128xf32> to vector<8x128xbf16>
    %c0_2 = arith.constant 0 : index
    %c0_3 = arith.constant 0 : index
    %5 = vector.load %arg3[%c0_2, %c0_3] : memref<128x128xbf16, #tpu.memory_space<vmem>>, vector<128x128xbf16>
    %cst = arith.constant dense<0.000000e+00> : vector<8x128xf32>
    %6 = tpu.matmul %4, %5, %cst {dimension_numbers = #tpu.dot_dimension_numbers<[1], [0], [0], [1], [0, 0, 1, 1], [], []>} : vector<8x128xbf16>, vector<128x128xbf16>, vector<8x128xf32> -> vector<8x128xf32>
    %c0_4 = arith.constant 0 : index
    %c0_5 = arith.constant 0 : index
    %7 = vector.load %arg4[%c0_4, %c0_5] : memref<1x128xf32, #tpu.memory_space<vmem>>, vector<1x128xf32>
    %8 = vector.broadcast %7 : vector<1x128xf32> to vector<8x128xf32>
    %9 = arith.addf %6, %8 : vector<8x128xf32>
    %cst_6 = arith.constant 5.000000e-01 : f32
    %10 = vector.broadcast %cst_6 : f32 to vector<8x128xf32>
    %11 = arith.mulf %10, %9 : vector<8x128xf32>
    %cst_7 = arith.constant 0.707106769 : f32
    %12 = vector.broadcast %cst_7 : f32 to vector<8x128xf32>
    %13 = arith.mulf %9, %12 : vector<8x128xf32>
    %14 = math.erf %13 : vector<8x128xf32>
    %cst_8 = arith.constant 1.000000e+00 : f32
    %15 = vector.broadcast %cst_8 : f32 to vector<8x128xf32>
    %16 = arith.addf %15, %14 : vector<8x128xf32>
    %17 = arith.mulf %11, %16 : vector<8x128xf32>
    %c0_9 = arith.constant 0 : index
    %c0_10 = arith.constant 0 : index
    %18 = vector.load %arg8[%c0_9, %c0_10] : memref<8x128xf32, #tpu.memory_space<vmem>>, vector<8x128xf32>
    %19 = arith.truncf %17 : vector<8x128xf32> to vector<8x128xbf16>
    %c0_11 = arith.constant 0 : index
    %c0_12 = arith.constant 0 : index
    %20 = vector.load %arg5[%c0_11, %c0_12] : memref<128x128xbf16, #tpu.memory_space<vmem>>, vector<128x128xbf16>
    %cst_13 = arith.constant dense<0.000000e+00> : vector<8x128xf32>
    %21 = tpu.matmul %19, %20, %cst_13 {dimension_numbers = #tpu.dot_dimension_numbers<[1], [0], [0], [1], [0, 0, 1, 1], [], []>} : vector<8x128xbf16>, vector<128x128xbf16>, vector<8x128xf32> -> vector<8x128xf32>
    %22 = arith.addf %18, %21 : vector<8x128xf32>
    %c0_14 = arith.constant 0 : index
    %c0_15 = arith.constant 0 : index
    %23 = vector.load %arg8[%c0_14, %c0_15] : memref<8x128xf32, #tpu.memory_space<vmem>>, vector<8x128xf32>
    tpu.vector_store %arg8[%c0_14, %c0_15], %22 {strides = array<i32>} : memref<8x128xf32, #tpu.memory_space<vmem>>, vector<8x128xf32>,
    %c1_i32 = arith.constant 1 : i32
    %24 = arith.cmpi eq, %arg1, %c1_i32 : i32
    %25 = arith.extui %24 : i1 to i32
    %c0_i32_16 = arith.constant 0 : i32
    %26 = arith.cmpi ne, %25, %c0_i32_16 : i32
    scf.if %26 {
      %c0_17 = arith.constant 0 : index
      %c0_18 = arith.constant 0 : index
      %27 = vector.load %arg8[%c0_17, %c0_18] : memref<8x128xf32, #tpu.memory_space<vmem>>, vector<8x128xf32>
      %c0_19 = arith.constant 0 : index
      %c0_20 = arith.constant 0 : index
      %28 = vector.load %arg6[%c0_19, %c0_20] : memref<1x128xf32, #tpu.memory_space<vmem>>, vector<1x128xf32>
      %29 = vector.broadcast %28 : vector<1x128xf32> to vector<8x128xf32>
      %30 = arith.addf %27, %29 : vector<8x128xf32>
      %c0_21 = arith.constant 0 : index
      %c0_22 = arith.constant 0 : index
      %31 = vector.load %arg7[%c0_21, %c0_22] : memref<8x128xf32, #tpu.memory_space<vmem>>, vector<8x128xf32>
      tpu.vector_store %arg7[%c0_21, %c0_22], %30 {strides = array<i32>} : memref<8x128xf32, #tpu.memory_space<vmem>>, vector<8x128xf32>,
    } else {
    }
    return
  }
  func.func @transform_0(%arg0: i32, %arg1: i32) -> (i32, i32) {
    %c0_i32 = arith.constant 0 : i32
    %c0_i32_0 = arith.constant 0 : i32
    return %arg0, %c0_i32 : i32, i32
  }
  func.func @transform_1(%arg0: i32, %arg1: i32) -> (i32, i32) {
    %c0_i32 = arith.constant 0 : i32
    %c0_i32_0 = arith.constant 0 : i32
    return %c0_i32, %arg1 : i32, i32
  }
  func.func @transform_2(%arg0: i32, %arg1: i32) -> (i32, i32) {
    %c0_i32 = arith.constant 0 : i32
    %c0_i32_0 = arith.constant 0 : i32
    return %c0_i32, %arg1 : i32, i32
  }
  func.func @transform_3(%arg0: i32, %arg1: i32) -> (i32, i32) {
    %c0_i32 = arith.constant 0 : i32
    %c0_i32_0 = arith.constant 0 : i32
    return %arg1, %c0_i32 : i32, i32
  }
  func.func @transform_4(%arg0: i32, %arg1: i32) -> (i32, i32) {
    %c0_i32 = arith.constant 0 : i32
    %c0_i32_0 = arith.constant 0 : i32
    %c0_i32_1 = arith.constant 0 : i32
    return %c0_i32, %c0_i32_0 : i32, i32
  }
  func.func @transform_5(%arg0: i32, %arg1: i32) -> (i32, i32) {
    %c0_i32 = arith.constant 0 : i32
    %c0_i32_0 = arith.constant 0 : i32
    return %arg0, %c0_i32 : i32, i32
  }
}

</mosaic_0001>

<bundles_post_ra>
// kernel: tpu_custom_call.1
= control target key start
LH: loop header
LB: loop body
LE: loop exit
PB: predicated region body
PF: predicated region fallthrough
CT: control target
= control target key end

     0   :  { %s1807_s0 = inlined_call_operand.hbm [shape: f32[16,128], index: 0, kind: input, shape index: {}]   ;;  %s1808_s1 = inlined_call_operand.hbm [shape: bf16[128,256], index: 1, kind: input, shape index: {}]   ;;  %s1809_s2 = inlined_call_operand.hbm [shape: f32[1,256], index: 2, kind: input, shape index: {}]   ;;  %s1810_s3 = inlined_call_operand.hbm [shape: bf16[256,128], index: 3, kind: input, shape index: {}]   ;;  %s1811_s4 = inlined_call_operand.hbm [shape: f32[1,128], index: 4, kind: input, shape index: {}]   ;;  %s1812_s5 = inlined_call_operand.hbm [shape: f32[16,128], index: 5, kind: output, shape index: {}]  }
   0x1   :  { %1837 = sst [smem:[#allocation30_spill]] %s1808_s1 }
   0x2   :  { %1838 = sst [smem:[#allocation31_spill]] %s1811_s4 }
   0x3   :  { %1839 = sst [smem:[#allocation32_spill]] %s1812_s5 }
   0x4   :  { %10 = vsyncpa [#allocation4], 0 }
   0x5   :  { %12 = vsyncpa [#allocation4 + $0x1], 0 }
   0x6   :  { %13 = vsyncpa [#allocation7], 0 }
   0x7   :  { %15 = vsyncpa [#allocation7 + $0x1], 0 }
   0x8   :  { %16 = vsyncpa [#allocation10], 0 }
   0x9   :  { %18 = vsyncpa [#allocation10 + $0x1], 0 }
   0xa   :  { %19 = vsyncpa [#allocation5], 0 }
   0xb   :  { %21 = vsyncpa [#allocation5 + $0x1], 0  ;;  %s1368_s18 = smov 0   ;;  %s1370_s19 = smov 0  }
   0xc   :  { %s1372_s20 = smov 0   ;;  %s1374_s21 = smov 0  }
   0xd   :  { %s1376_s22 = smov 0   ;;  %s1378_s23 = smov 0  }
   0xe   :  { %s1380_s24 = smov 0   ;;  %s1382_s25 = smov 0  }
   0xf   :  { %s1384_s26 = smov 0   ;;  %s1386_s27 = smov 0  }
  0x10   :  { %s1388_s28 = smov 0  }
  0x11 LB: > { %1840 = sst [smem:[#allocation18_spill]] %s1288_s19  ;;  %s1422_s29 = sadd.s32 4294967295, %s1324_s28   ;;  %s1324_s28 = sphi %s1388_s28, %s27_s28   ;;  %s1320_s27 = sphi %s1386_s27, %s1898_s27   ;;  %s1316_s26 = sphi %s1384_s26, %s1904_s26   ;;  %s1312_s25 = sphi %s1382_s25, %s1896_s25   ;;  %s1308_s24 = sphi %s1380_s24, %s1903_s24   ;;  %s1304_s23 = sphi %s1378_s23, %s1895_s23   ;;  %s1300_s22 = sphi %s1376_s22, %s1902_s22   ;;  %s1296_s21 = sphi %s1374_s21, %s1901_s21   ;;  %s1292_s20 = sphi %s1372_s20, %s1900_s20   ;;  %s1288_s19 = sphi %s1370_s19, %s1899_s19   ;;  %s1284_s18 = sphi %s1368_s18, %s1893_s18  }
  0x12   : > { %1841 = sst [smem:[#allocation19_spill]] %s1296_s21  ;;  %s789_s30 = sadd.s32 4294967294, %s1324_s28  }
  0x13   : > { %1842 = sst [smem:[#allocation20_spill]] %s1304_s23  ;;  %p1816_p0 = scmp.eq.s32.totalorder %s1324_s28, 0 }
  0x14   : > { %1843 = sst [smem:[#allocation21_spill]] %s1308_s24  ;;  %p59_p1 = scmp.ne.s32.totalorder %s1300_s22, %s1296_s21 }
  0x15   : > { %1844 = sst [smem:[#allocation22_spill]] %s1312_s25  ;;  %p1813_p2 = scmp.eq.s32.totalorder %s1422_s29, 0 }
  0x16   : > { %1845 = sst [smem:[#allocation23_spill]] %s1320_s27  ;;  %p79_p3 = scmp.ne.s32.totalorder %s1292_s20, %s1288_s19 }
  0x17   : > { %1846 = sst [smem:[#allocation24_spill]] %s1422_s29  ;;  %p85_p4 = scmp.ne.s32.totalorder %s1288_s19, %s1284_s18 }
  0x18   : > { %p1435_p5 = por %p1813_p2, %p59_p1  ;;  %p1442_p7 = por %p79_p3, %p1816_p0 }
  0x19   : > { %p1448_p8 = por %p85_p4, %p1813_p2  ;;  %p188_p9 = scmp.eq.s32.totalorder %s789_s30, 3 }
  0x1a   : > { %s1847_s7 = scalar_select %p1435_p5, 1, 0 }
  0x1b   : > { %s1849_s9 = scalar_select %p1448_p8, 1, 0 }
  0x1c   : > { %p790_p10 = scmp.ge.s32.totalorder %s1324_s28, 1  ;;  %p195_p11 = scmp.lt.s32.totalorder %s1324_s28, 5 }
  0x1d   : > { %1850 = sst [smem:[#allocation25_spill]] %s1849_s9  ;;  %p1454_p12 = por %p188_p9, %p59_p1 }
  0x1e   : > { %p1458_p13 = pnand %p790_p10, %p195_p11  ;;  %s1326_s12 = smov [#allocation11]  }
  0x1f   : > { %s1851_s10 = scalar_select %p1454_p12, 1, 0 }
  0x20   : > { %s1853_s11 = scalar_select %p1458_p13, 1, 0 }
  0x21   : > { %1852 = sst [smem:[#allocation26_spill]] %s1851_s10  ;;  %s208_s13 = sshll.u32 %s1326_s12, 4  ;;  %s209_s13 = int_to_ptr.vmem [resolvable:$true] %s208_s13 }
  0x22   : > { %p904_p3 = pneg %p1458_p13  ;;  %p1815_p4 = scmp.lt.s32.totalorder %s1324_s28, 4 }
  0x23   : > { %s1856_s4 = sld [smem:[#allocation31_spill]] }
  0x24   : > { %p1468_p6 = pnand %p904_p3, %p1813_p2  ;;  %p1476_p1 = pnand %p1815_p4, %p1442_p7 }
  0x26   : > { %s1855_s16 = scalar_select %p1476_p1, 1, 0 }
  0x27   : > { %p1044_p10 = pneg %p1468_p6 }
  0x29   : > { %s1042_s30 = scalar_lea.hbm %s1856_s4, 16 }
  0x2a   : > { %p1043_p9 = scmp.ne.s32.totalorder %s1856_s4, %s1042_s30  ;;  %p1049_p2 = scmp.lt.u32.totalorder %s1042_s30, %s1856_s4 }
  0x2c   : > { %p1045_p11 = pnand %p1044_p10, %p1043_p9 }
  0x2e   : > { %p1046_p3 = pneg %p1045_p11 }
  0x30   : > { %p1051_p7 = pnand %p1049_p2, %p1046_p3 }
  0x32   : > { %1054 = shalt.err (!%p1051_p7)
}
  0x33   : > { %s1055_s10 = scalar_lea.vmem %s209_s13, 16  ;;  %s1062_s17 = scalar_lea.vmem %s209_s13, 32 }
  0x34   : > { %p1056_p4 = scmp.ne.s32.totalorder %s209_s13, %s1055_s10  ;;  %p1063_p8 = scmp.lt.s32.totalorder %s209_s13, %s209_s13 }
  0x35   : > { %p1064_p5 = scmp.lt.s32.totalorder %s1062_s17, %s1055_s10 }
  0x36   : > { %p1058_p0 = pnand %p1056_p4, %p1044_p10 }
  0x37   : > { %p1065_p13 = por %p1064_p5, %p1063_p8 }
  0x38   : > { %p1059_p12 = pneg %p1058_p0 }
  0x3a   : > { %p1066_p1 = pnand %p1065_p13, %p1059_p12 }
  0x3c   : > { %1069 = shalt.err (!%p1066_p1)
}
  0x3d   : > { %907 = dma.hbm_to_vmem [thread:$0]  (!%p1468_p6), %s1856_s4, 16, %s209_s13, [#allocation10]  }
  0x3e   : > { %s1821_s14 = sand.u32 1, %s1292_s20   ;;  %s796_s30 = sshll.u32 %s1316_s26, 6 }
  0x3f   : > { %s1500_s12 = sshll.u32 %s1821_s14, 6  ;;  %s1857_s1 = sld [smem:[#allocation30_spill]] }
  0x40   : > { %s241_s15 = scalar_lea.vmem [#allocation6], %s1500_s12  ;;  %s1858_s13 = sand.u32 1, %s1324_s28  }
  0x41   : > { %s247_s6 = sshll.u32 %s241_s15, 4  ;;  %s1512_s18 = scalar_lea.sflag [#allocation7], %s1858_s13  ;;  %s1508_s6 = int_to_ptr.vmem [resolvable:$true] %s247_s6 }
  0x42   : > { %p1859_p2 = scmp.ne.s32.totalorder %s1855_s16, 0 }
  0x44   : > { %p1518_p5 = pneg %p1859_p2 }
  0x45   : > { %s1505_s17 = scalar_lea.hbm %s1857_s1, %s796_s30  ;;  %s1075_s8 = scalar_lea.hbm %s1857_s1, 2048 }
  0x46   : > { %s1070_s4 = scalar_lea.hbm %s1505_s17, 1024  ;;  %p1076_p12 = scmp.lt.u32.totalorder %s1505_s17, %s1857_s1 }
  0x47   : > { %p1071_p0 = scmp.ne.s32.totalorder %s1505_s17, %s1070_s4  ;;  %p1077_p13 = scmp.lt.u32.totalorder %s1075_s8, %s1070_s4 }
  0x48   : > { %p1079_p1 = scmp.lt.u32.totalorder %s1070_s4, %s1505_s17 }
  0x49   : > { %p1073_p6 = pnand %p1518_p5, %p1071_p0  ;;  %p1078_p4 = por %p1077_p13, %p1076_p12 }
  0x4b   : > { %p1074_p8 = pneg %p1073_p6  ;;  %p1080_p9 = por %p1079_p1, %p1078_p4 }
  0x4d   : > { %p1081_p10 = pnand %p1080_p9, %p1074_p8 }
  0x4f   : > { %1084 = shalt.err (!%p1081_p10)
}
  0x50   : > { %s1085_s13 = scalar_lea.vmem %s1508_s6, 1024  ;;  %s1327_s30 = smov [#allocation6]  }
  0x51   : > { %p1086_p11 = scmp.ne.s32.totalorder %s1508_s6, %s1085_s13  ;;  %s1090_s10 = sshll.u32 %s1327_s30, 4  ;;  %s1091_s10 = int_to_ptr.vmem [resolvable:$false] %s1090_s10 }
  0x52   : > { %s1092_s21 = scalar_lea.vmem %s1091_s10, 2048  ;;  %p1093_p0 = scmp.lt.s32.totalorder %s1508_s6, %s1091_s10 }
  0x53   : > { %p1088_p3 = pnand %p1086_p11, %p1518_p5  ;;  %p1094_p6 = scmp.lt.s32.totalorder %s1092_s21, %s1085_s13 }
  0x55   : > { %p1089_p7 = pneg %p1088_p3  ;;  %p1095_p12 = por %p1094_p6, %p1093_p0 }
  0x57   : > { %p1096_p13 = pnand %p1095_p12, %p1089_p7 }
  0x59   : > { %1099 = shalt.err (!%p1096_p13)
}
  0x5a   : > { %s1328_s4 = smov 128   ;;  %s1823_s8 = smov 64  }
  0x5b   : > { %s1824_s15 = smov 4   ;;  %s36_s13 = sadd.s32 1, %s1316_s26 }
  0x5c   : > { %914 = dma.hbm_to_vmem [thread:$0]  (!%p1859_p2), %s1505_s17, 1024, %s1508_s6, %s1512_s18, %s1328_s4, %s1823_s8, %s1824_s15  }
  0x5d   : > { %s39_s30 = sadd.s32 1, %s1320_s27  ;;  %p37_p8 = scmp.ge.s32.totalorder %s36_s13, 2 }
  0x5e   : > { %s46_s10 = sadd.s32 1, %s1304_s23  ;;  %p53_p4 = scmp.ne.s32.totalorder %s1304_s23, %s1300_s22 }
  0x5f   : > { %s219_s21 = sand.u32 1, %s1304_s23   ;;  %s1906_s13 = smov (%p37_p8, %s36_s13), 0 }
  0x60   : > { %1861 = sst [smem:[#allocation27_spill]] %s1906_s13  ;;  %s1908_s30 = smov (!%p37_p8, %s39_s30), %s1320_s27 }
  0x61   : > { %p1862_p1 = scmp.eq.s32.totalorder %s1324_s28, 0  ;;  %s69_s17 = ssub.s32 %s1316_s26, %s1906_s13 }
  0x62   : > { %p41_p10 = scmp.ge.s32.totalorder %s1908_s30, 2  ;;  %p70_p11 = scmp.eq.s32.totalorder %s69_s17, 0 }
  0x63   : > { %p1555_p9 = por %p1862_p1, %p53_p4  ;;  %p1864_p3 = scmp.eq.s32.totalorder %s1422_s29, 3 }
  0x64   : > { %s1910_s30 = smov (%p41_p10, %s1908_s30), 0  ;;  %s1867_s4 = sadd.s32 1, %s1292_s20 }
  0x65   : > { %p1563_p7 = por %p1864_p3, %p53_p4  ;;  %1866 = sst [smem:[#allocation28_spill]] %s1910_s30 }
  0x66   : > { %s1572_s8 = scalar_select %p70_p11, %s1292_s20, %s1867_s4  }
  0x67   : > { %s1865_s6 = scalar_select %p1563_p7, 1, 0 }
  0x68   : > { %s43_s15 = ssub.s32 %s1320_s27, %s1910_s30  ;;  %s793_s5 = sshll.u32 %s219_s21, 3 }
  0x69   : > { %p44_p0 = scmp.eq.s32.totalorder %s43_s15, 0  ;;  %s794_s25 = sshll.u32 %s1320_s27, 7 }
  0x6a   : > { %s223_s13 = scalar_lea.vmem [#allocation3], %s793_s5  ;;  %s1583_s29 = scalar_lea.hbm %s1807_s0, %s794_s25 }
  0x6b   : > { %s230_s24 = sshll.u32 %s223_s13, 4  ;;  %p1869_p6 = scmp.lt.s32.totalorder %s1324_s28, 4  ;;  %s1585_s24 = int_to_ptr.vmem [resolvable:$true] %s230_s24 }
  0x6c   : > { %s1578_s9 = scalar_select %p44_p0, %s1304_s23, %s46_s10  }
  0x6d   : > { %p1591_p12 = pnand %p1869_p6, %p1555_p9  ;;  %s797_s5 = sshll.u32 %s1316_s26, 4 }
  0x6e   : > { %1868 = sst [smem:[#allocation29_spill]] %s1578_s9  ;;  %s1871_s13 = sand.u32 1, %s1292_s20  }
  0x6f   : > { %s1598_s10 = scalar_lea.vmem [#allocation8], %s1871_s13  ;;  %s1604_s17 = scalar_lea.hbm %s1809_s2, %s797_s5 }
  0x70   : > { %s220_s1 = scalar_lea.sflag [#allocation4], %s219_s21  ;;  %s1100_s30 = scalar_lea.hbm %s1583_s29, 128 }
  0x71   : > { %p1101_p13 = scmp.ne.s32.totalorder %s1583_s29, %s1100_s30  ;;  %p1102_p8 = pneg %p1591_p12 }
  0x72   : > { %s1105_s13 = scalar_lea.hbm %s1807_s0, 256  ;;  %p1106_p9 = scmp.lt.u32.totalorder %s1583_s29, %s1807_s0 }
  0x73   : > { %p1103_p4 = pnand %p1102_p8, %p1101_p13  ;;  %p1107_p10 = scmp.lt.u32.totalorder %s1105_s13, %s1100_s30 }
  0x74   : > { %p1109_p3 = scmp.lt.u32.totalorder %s1100_s30, %s1583_s29 }
  0x75   : > { %p1104_p1 = pneg %p1103_p4  ;;  %p1108_p11 = por %p1107_p10, %p1106_p9 }
  0x77   : > { %p1110_p0 = por %p1109_p3, %p1108_p11 }
  0x79   : > { %p1111_p6 = pnand %p1110_p0, %p1104_p1 }
  0x7b   : > { %1114 = shalt.err (!%p1111_p6)
}
  0x7c   : > { %s1115_s21 = scalar_lea.vmem %s1585_s24, 128  ;;  %s1331_s27 = smov [#allocation3]  }
  0x7d   : > { %p1116_p13 = scmp.ne.s32.totalorder %s1585_s24, %s1115_s21  ;;  %s1120_s9 = sshll.u32 %s1331_s27, 4  ;;  %s1121_s9 = int_to_ptr.vmem [resolvable:$false] %s1120_s9 }
  0x7e   : > { %s1122_s23 = scalar_lea.vmem %s1121_s9, 256  ;;  %p1123_p2 = scmp.lt.s32.totalorder %s1585_s24, %s1121_s9 }
  0x7f   : > { %p1118_p4 = pnand %p1116_p13, %p1102_p8  ;;  %p1124_p9 = scmp.lt.s32.totalorder %s1122_s23, %s1115_s21 }
  0x81   : > { %p1119_p7 = pneg %p1118_p4  ;;  %p1125_p10 = por %p1124_p9, %p1123_p2 }
  0x83   : > { %p1126_p11 = pnand %p1125_p10, %p1119_p7 }
  0x85   : > { %1129 = shalt.err (!%p1126_p11)
}
  0x86   : > { %911 = dma.hbm_to_vmem [thread:$0]  (!%p1591_p12), %s1583_s29, 128, %s1585_s24, %s220_s1  }
  0x87   : > { %s1872_s30 = sshll.u32 %s1598_s10, 4  ;;  %s1130_s5 = scalar_lea.hbm %s1604_s17, 16  ;;  %s268_s30 = int_to_ptr.vmem [resolvable:$true] %s1872_s30 }
  0x88   : > { %p1131_p8 = scmp.ne.s32.totalorder %s1604_s17, %s1130_s5  ;;  %s1135_s15 = scalar_lea.hbm %s1809_s2, 32 }
  0x89   : > { %p1136_p7 = scmp.lt.u32.totalorder %s1604_s17, %s1809_s2  ;;  %p1137_p3 = scmp.lt.u32.totalorder %s1135_s15, %s1130_s5 }
  0x8a   : > { %p1133_p1 = pnand %p1131_p8, %p1518_p5  ;;  %p1139_p6 = scmp.lt.u32.totalorder %s1130_s5, %s1604_s17 }
  0x8b   : > { %p1138_p0 = por %p1137_p3, %p1136_p7 }
  0x8c   : > { %p1134_p2 = pneg %p1133_p1 }
  0x8d   : > { %p1140_p13 = por %p1139_p6, %p1138_p0 }
  0x8f   : > { %p1141_p12 = pnand %p1140_p13, %p1134_p2 }
  0x91   : > { %1144 = shalt.err (!%p1141_p12)
}
  0x92   : > { %s1145_s24 = scalar_lea.vmem %s268_s30, 16  ;;  %s1332_s29 = smov [#allocation8]  }
  0x93   : > { %p1146_p4 = scmp.ne.s32.totalorder %s268_s30, %s1145_s24  ;;  %s1150_s10 = sshll.u32 %s1332_s29, 4  ;;  %s1151_s10 = int_to_ptr.vmem [resolvable:$false] %s1150_s10 }
  0x94   : > { %s1152_s1 = scalar_lea.vmem %s1151_s10, 32  ;;  %p1153_p11 = scmp.lt.s32.totalorder %s268_s30, %s1151_s10 }
  0x95   : > { %p1148_p9 = pnand %p1146_p4, %p1518_p5  ;;  %p1154_p8 = scmp.lt.s32.totalorder %s1152_s1, %s1145_s24 }
  0x97   : > { %p1149_p10 = pneg %p1148_p9  ;;  %p1155_p1 = por %p1154_p8, %p1153_p11 }
  0x99   : > { %p1156_p3 = pnand %p1155_p1, %p1149_p10 }
  0x9b   : > { %1159 = shalt.err (!%p1156_p3)
}
  0x9c   : > { %p1873_p7 = scmp.ne.s32.totalorder %s1855_s16, 0  ;;  %s831_s21 = sshll.u32 %s1316_s26, 10 }
  0x9d   : > { %s1655_s23 = scalar_lea.hbm %s1810_s3, %s831_s21  ;;  %s278_s5 = scalar_lea.vmem [#allocation9], %s1500_s12 }
  0x9e   : > { %917 = dma.hbm_to_vmem [thread:$0]  (!%p1873_p7), %s1604_s17, 16, %s268_s30, %s1512_s18  }
  0x9f   : > { %s285_s19 = sshll.u32 %s278_s5, 4  ;;  %s1874_s25 = sand.u32 1, %s1324_s28   ;;  %s1658_s19 = int_to_ptr.vmem [resolvable:$true] %s285_s19 }
  0xa0   : > { %s1662_s15 = scalar_lea.sflag [#allocation10], %s1874_s25  ;;  %s1160_s4 = scalar_lea.hbm %s1655_s23, 1024 }
  0xa1   : > { %p1161_p2 = scmp.ne.s32.totalorder %s1655_s23, %s1160_s4  ;;  %s1165_s30 = scalar_lea.hbm %s1810_s3, 2048 }
  0xa2   : > { %p1166_p13 = scmp.lt.u32.totalorder %s1655_s23, %s1810_s3  ;;  %p1167_p12 = scmp.lt.u32.totalorder %s1165_s30, %s1160_s4 }
  0xa3   : > { %p1163_p0 = pnand %p1161_p2, %p1518_p5  ;;  %p1169_p9 = scmp.lt.u32.totalorder %s1160_s4, %s1655_s23 }
  0xa4   : > { %p1168_p4 = por %p1167_p12, %p1166_p13 }
  0xa5   : > { %p1164_p6 = pneg %p1163_p0 }
  0xa6   : > { %p1170_p10 = por %p1169_p9, %p1168_p4 }
  0xa8   : > { %p1171_p11 = pnand %p1170_p10, %p1164_p6 }
  0xaa   : > { %1174 = shalt.err (!%p1171_p11)
}
  0xab   : > { %s1175_s12 = scalar_lea.vmem %s1658_s19, 1024  ;;  %s1333_s29 = smov [#allocation9]  }
  0xac   : > { %p1176_p8 = scmp.ne.s32.totalorder %s1658_s19, %s1175_s12  ;;  %s1180_s10 = sshll.u32 %s1333_s29, 4  ;;  %s1181_s10 = int_to_ptr.vmem [resolvable:$false] %s1180_s10 }
  0xad   : > { %s1182_s1 = scalar_lea.vmem %s1181_s10, 2048  ;;  %p1183_p2 = scmp.lt.s32.totalorder %s1658_s19, %s1181_s10 }
  0xae   : > { %p1178_p1 = pnand %p1176_p8, %p1518_p5  ;;  %p1184_p0 = scmp.lt.s32.totalorder %s1182_s1, %s1175_s12 }
  0xb0   : > { %p1179_p3 = pneg %p1178_p1  ;;  %p1185_p13 = por %p1184_p0, %p1183_p2 }
  0xb2   : > { %p1186_p12 = pnand %p1185_p13, %p1179_p3 }
  0xb4   : > { %1189 = shalt.err (!%p1186_p12)
}
  0xb5   : > { %s1875_s21 = smov 4   ;;  %s1876_s27 = smov 64  }
  0xb6   : > { %920 = dma.hbm_to_vmem [thread:$0]  (!%p1873_p7), %s1655_s23, 1024, %s1658_s19, %s1662_s15, %s1876_s27, %s1876_s27, %s1875_s21  }
  0xb7   : > { %p1877_p5 = scmp.ne.s32.totalorder %s1853_s11, 0 }
  0xb8   : > { %s1692_s14 = sand.u32 (!%p1877_p5), 1, %s1300_s22   ;;  %p1878_p6 = scmp.ne.s32.totalorder (!%p1877_p5), %s1847_s7, 0 }
  0xb9   : > { %297 = sbr.rel (%p1877_p5) target bundleno = 743 (0x2e7), region = 40  ;;  %s802_s9 = sshll.u32 (!%p1877_p5), %s1692_s14, 3 }
  0xba   : > { %s300_s5 = scalar_lea.sflag (!%p1877_p5), [#allocation4], %s1692_s14  ;;  %s1696_s25 = scalar_lea.vmem (!%p1877_p5), [#allocation3], %s802_s9 }
  0xc0   : > { %1263 = dma.done.wait (%p1878_p6), %s300_s5, 128  }
  0xc1   : > { %1265 = vsyncadd (%p1878_p6), %s300_s5, 4294967168  ;;  %s1879_s16 = sld [smem:[#allocation24_spill]]  ;;  %s1880_s23 = sld [smem:[#allocation18_spill]] }
  0xc2   : > { %s1881_s19 = sld [smem:[#allocation25_spill]] }
  0xc7   : > { %s308_s11 = sand.u32 1, %s1879_s16   ;;  %s310_s15 = sand.u32 1, %s1880_s23  }
  0xc8   : > { %s803_s4 = sshll.u32 %s310_s15, 6  ;;  %s309_s18 = scalar_lea.sflag [#allocation7], %s308_s11 }
  0xc9   : > { %s1704_s17 = scalar_lea.vmem [#allocation6], %s803_s4  ;;  %p1882_p7 = scmp.ne.s32.totalorder %s1881_s19, 0 }
  0xcb   : > { %1267 = dma.done.wait (%p1882_p7), %s309_s18, 1040  }
  0xcc   : > { %1269 = vsyncadd (%p1882_p7), %s309_s18, 4294966256  ;;  %s1710_s30 = scalar_lea.vmem [#allocation8], %s310_s15  ;;  %s326_s13 = scalar_lea.sflag [#allocation10], %s308_s11 }
  0xcd   : > { %s1712_s7 = scalar_lea.vmem [#allocation9], %s803_s4 }
  0xce   : > { %1271 = dma.done.wait (%p1882_p7), %s326_s13, 1024  }
  0xcf   : > { %1273 = vsyncadd (%p1882_p7), %s326_s13, 4294966272  ;;  %p1883_p4 = scmp.eq.s32.totalorder %s1879_s16, 0 }
  0xd1   : > { %1275 = dma.done.wait (%p1883_p4), [#allocation10], 16   ;;  %p1884_p9 = pmov %p1883_p4 }
  0xd2   : > { %s1722_s24 = scalar_lea.vmem [#allocation12], %s802_s9  ;;  %s1885_s12 = sld [smem:[#allocation21_spill]] }
  0xd3   : > { %1277 = vsyncadd (%p1884_p9), [#allocation10], 4294967280 }
  0xd8   : > { %p807_p10 = scmp.ne.s32.totalorder %s1885_s12, 0 }
  0xd9   : > { %v1334_v0 = vmov (!%p807_p10), 0.0  }
  0xda   : > { %379 = sbr.rel (%p807_p10) target bundleno = 225 (0xe1), region = 64  ;;  %380 = vst [vmem:[#allocation2] sm:$0xff] (!%p807_p10), %v1334_v0 }
  0xe1 PF: > { %v1024_v1 = vld [vmem:[%s1704_s17] sm:$0xff]   ;;  %v1335_v2 = vmov 0.0   ;;  %v1025_v3 = vld [vmem:[%s1704_s17 + $0x8] sm:$0xff]   ;;  %vm1336_vm0 = vmmov 0   ;;  %v1026_v4 = vld [vmem:[%s1704_s17 + $0x10] sm:$0xff]   ;;  %s1886_s29 = sld [smem:[#allocation21_spill]] }
  0xe2   : > { %850 = vmatprep.subr.bf16.mxu0 %v1335_v2  ;;  %870 = vmatprep.subr.bf16.mxu1 %v1335_v2  ;;  %v1032_v5 = vld [vmem:[%s1712_s7] sm:$0xff]   ;;  %v1027_v6 = vld [vmem:[%s1704_s17 + $0x18] sm:$0xff]   ;;  %v1033_v7 = vld [vmem:[%s1712_s7 + $0x8] sm:$0xff]  }
  0xe3   : > { %851 = vmatpush3.bf16.msra.mxu0 %v1024_v1  ;;  %866 = vmatprep.mubr.msk.bf16.mxu0 %vm1336_vm0, %v1335_v2  ;;  %v1028_v8 = vld [vmem:[%s1704_s17 + $0x20] sm:$0xff]   ;;  %v1034_v9 = vld [vmem:[%s1712_s7 + $0x10] sm:$0xff]   ;;  %v1029_v10 = vld [vmem:[%s1704_s17 + $0x28] sm:$0xff]  }
  0xe4   : > { %852 = vmatprep.subr.bf16.mxu0 %v1335_v2  ;;  %886 = vmatprep.mubr.msk.bf16.mxu1 %vm1336_vm0, %v1335_v2  ;;  %v1030_v11 = vld [vmem:[%s1704_s17 + $0x30] sm:$0xff]   ;;  %v1031_v12 = vld [vmem:[%s1704_s17 + $0x38] sm:$0xff]   ;;  %v1036_v16 = vld [vmem:[%s1712_s7 + $0x20] sm:$0xff]  }
  0xe5   : > { %871 = vmatpush3.bf16.msra.mxu1 %v1032_v5  ;;  %v381_v13 = vld [vmem:[%s1696_s25] sm:$0xff]  ;;  %v808_v20 = vld [vmem:[%s1710_s30] ss:$0 sm:$0xff] }
  0xe6   : > { %872 = vmatprep.subr.bf16.mxu1 %v1335_v2  ;;  %v382_v14 = vpack.c.bf16 %v381_v13, %v381_v13  ;;  %v1035_v15 = vld [vmem:[%s1712_s7 + $0x18] sm:$0xff]   ;;  %v1037_v17 = vld [vmem:[%s1712_s7 + $0x28] sm:$0xff]   ;;  %v1038_v18 = vld [vmem:[%s1712_s7 + $0x30] sm:$0xff]  }
  0xe7   : > { %853 = vmatpush3.bf16.msra.mxu0 %v1025_v3  ;;  %v1039_v19 = vld [vmem:[%s1712_s7 + $0x38] sm:$0xff]   ;;  %v499_v32 = vld [vmem:[#allocation2] sm:$0xff]  ;;  %p825_p11 = scmp.ne.s32.totalorder %s1886_s29, 1 }
  0xe8   : > { %854 = vmatprep.subr.bf16.mxu0 %v1335_v2  ;;  %v826_v39 = vld [vmem:[#allocation11] ss:$0 sm:$0xff] (!%p825_p11) }
  0xe9   : > { %873 = vmatpush3.bf16.msra.mxu1 %v1033_v7 }
  0xea   : > { %874 = vmatprep.subr.bf16.mxu1 %v1335_v2 }
  0xeb   : > { %855 = vmatpush3.bf16.msra.mxu0 %v1026_v4 }
  0xec   : > { %856 = vmatprep.subr.bf16.mxu0 %v1335_v2 }
  0xed   : > { %875 = vmatpush3.bf16.msra.mxu1 %v1034_v9 }
  0xee   : > { %876 = vmatprep.subr.bf16.mxu1 %v1335_v2 }
  0xef   : > { %857 = vmatpush3.bf16.msra.mxu0 %v1027_v6 }
  0xf0   : > { %858 = vmatprep.subr.bf16.mxu0 %v1335_v2 }
  0xf1   : > { %877 = vmatpush3.bf16.msra.mxu1 %v1035_v15 }
  0xf2   : > { %878 = vmatprep.subr.bf16.mxu1 %v1335_v2 }
  0xf3   : > { %859 = vmatpush3.bf16.msra.mxu0 %v1028_v8 }
  0xf4   : > { %860 = vmatprep.subr.bf16.mxu0 %v1335_v2 }
  0xf5   : > { %879 = vmatpush3.bf16.msra.mxu1 %v1036_v16 }
  0xf6   : > { %880 = vmatprep.subr.bf16.mxu1 %v1335_v2 }
  0xf7   : > { %861 = vmatpush3.bf16.msra.mxu0 %v1029_v10 }
  0xf8   : > { %862 = vmatprep.subr.bf16.mxu0 %v1335_v2 }
  0xf9   : > { %881 = vmatpush3.bf16.msra.mxu1 %v1037_v17 }
  0xfa   : > { %882 = vmatprep.subr.bf16.mxu1 %v1335_v2 }
  0xfb   : > { %863 = vmatpush3.bf16.msra.mxu0 %v1030_v11 }
  0xfc   : > { %864 = vmatprep.subr.bf16.mxu0 %v1335_v2 }
  0xfd   : > { %883 = vmatpush3.bf16.msra.mxu1 %v1038_v18 }
  0xfe   : > { %884 = vmatprep.subr.bf16.mxu1 %v1335_v2 }
  0xff   : > { %865 = vmatpush3.bf16.msra.mxu0 %v1031_v12 }
 0x101   : > { %885 = vmatpush3.bf16.msra.mxu1 %v1039_v19 }
 0x102   : > { %867 = vmatmul.mubr.bf16.vlgmr.msra.gmra.mrb[0].mxu0 %v382_v14 }
 0x1d5   : > { %v488_v21 = vpop.f32.mrb[0].mxu0 }
 0x1d6   : > { %v489_v22 = vadd.f32 %v808_v20, %v488_v21  ;;  %v868_v23 = vpop.f32.mrb[1].mxu0 }
 0x1d7   : > { %v491_v24 = vpop.f32.mrb[2].mxu0 }
 0x1d8   : > { %v495_v25 = vmul.f32 0.70710677, %v489_v22  ;;  %v869_v26 = vpop.f32.mrb[3].mxu0  ;;  %v494_v28 = vmul.f32 0.5, %v489_v22 }
 0x1da   : > { %1040 = verf.f32 %v495_v25 }
 0x1e4   : > { %v1041_v27 = vpop.eup %1040 }
 0x1e5   : > { %v497_v29 = vadd.f32 1.0, %v1041_v27 }
 0x1e7   : > { %v498_v30 = vmul.f32 %v497_v29, %v494_v28 }
 0x1e9   : > { %v500_v31 = vpack.c.bf16 %v498_v30, %v498_v30 }
 0x1eb   : > { %887 = vmatmul.mubr.bf16.vlgmr.msra.gmra.mrb[0].mxu1 %v500_v31 }
 0x2bb   : > { %610 = sbr.rel (%p825_p11) target bundleno = 716 (0x2cc), region = 68 }
 0x2be   : > { %v599_v33 = vpop.f32.mrb[0].mxu1 }
 0x2bf   : > { %v605_v34 = vadd.f32 %v599_v33, %v499_v32  ;;  %v888_v35 = vpop.f32.mrb[1].mxu1 }
 0x2c0   : > { %v602_v36 = vpop.f32.mrb[2].mxu1 }
 0x2c1   : > { %606 = vst [vmem:[#allocation2] sm:$0xff] %v605_v34  ;;  %v889_v37 = vpop.f32.mrb[3].mxu1 }
 0x2c8   : > { %v611_v38 = vld [vmem:[#allocation2] sm:$0xff] }
 0x2c9   : > { %v619_v40 = vadd.f32 %v826_v39, %v611_v38 }
 0x2cb   : > { %620 = vst [vmem:[%s1722_s24] sm:$0xff] %v619_v40 }
 0x2cc PF: > { %s1887_s10 = sld [smem:[#allocation22_spill]]  ;;  %s1888_s9 = sld [smem:[#allocation32_spill]] }
 0x2cd   : > { %s635_s25 = sshll.u32 %s1722_s24, 4  ;;  %s622_s16 = scalar_lea.sflag [#allocation5], %s1692_s14  ;;  %s636_s25 = int_to_ptr.vmem [resolvable:$true] %s635_s25 }
 0x2ce   : > { %s1190_s23 = scalar_lea.vmem %s636_s25, 128  ;;  %p1889_p1 = scmp.ne.s32.totalorder %s1865_s6, 0 }
 0x2cf   : > { %p1191_p8 = scmp.ne.s32.totalorder %s636_s25, %s1190_s23  ;;  %s1337_s19 = smov [#allocation12]  }
 0x2d0   : > { %s1194_s11 = sshll.u32 %s1337_s19, 4  ;;  %s1195_s11 = int_to_ptr.vmem [resolvable:$false] %s1194_s11 }
 0x2d1   : > { %p1192_p3 = pnand %p1191_p8, %p1889_p1  ;;  %s1196_s15 = scalar_lea.vmem %s1195_s11, 256 }
 0x2d2   : > { %s828_s1 = sshll.u32 %s1887_s10, 7  ;;  %p1197_p0 = scmp.lt.s32.totalorder %s636_s25, %s1195_s11 }
 0x2d3   : > { %s1749_s5 = scalar_lea.hbm %s1888_s9, %s828_s1  ;;  %p1193_p2 = pneg %p1192_p3 }
 0x2d4   : > { %p1198_p13 = scmp.lt.s32.totalorder %s1196_s15, %s1190_s23 }
 0x2d6   : > { %p1199_p12 = por %p1198_p13, %p1197_p0 }
 0x2d8   : > { %p1200_p5 = pnand %p1199_p12, %p1193_p2 }
 0x2da   : > { %1203 = shalt.err (!%p1200_p5)
}
 0x2db   : > { %s1204_s14 = scalar_lea.hbm %s1749_s5, 128  ;;  %s1208_s17 = scalar_lea.hbm %s1888_s9, 256 }
 0x2dc   : > { %p1205_p6 = scmp.ne.s32.totalorder %s1749_s5, %s1204_s14  ;;  %p1209_p9 = scmp.lt.u32.totalorder %s1749_s5, %s1888_s9 }
 0x2dd   : > { %p1210_p10 = scmp.lt.u32.totalorder %s1208_s17, %s1204_s14  ;;  %p1212_p8 = scmp.lt.u32.totalorder %s1204_s14, %s1749_s5 }
 0x2de   : > { %p1206_p7 = pnand %p1205_p6, %p1889_p1 }
 0x2df   : > { %p1211_p11 = por %p1210_p10, %p1209_p9 }
 0x2e0   : > { %p1207_p4 = pneg %p1206_p7 }
 0x2e1   : > { %p1213_p3 = por %p1212_p8, %p1211_p11 }
 0x2e3   : > { %p1214_p2 = pnand %p1213_p3, %p1207_p4 }
 0x2e5   : > { %1217 = shalt.err (!%p1214_p2)
}
 0x2e6   : > { %902 = dma.vmem_to_hbm [thread:$0]  (%p1889_p1), %s636_s25, 128, %s1749_s5, %s622_s16  }
 0x2e7 PF: > { %s1890_s7 = sld [smem:[#allocation19_spill]]  ;;  %s1891_s24 = sld [smem:[#allocation26_spill]] }
 0x2e8   : > { %p928_p0 = scmp.ge.s32.totalorder %s1324_s28, 2 }
 0x2ed   : > { %s647_s12 = sand.u32 1, %s1890_s7   ;;  %p1892_p13 = scmp.ne.s32.totalorder %s1891_s24, 0 }
 0x2ee   : > { %s648_s29 = scalar_lea.sflag [#allocation5], %s647_s12 }
 0x2ef   : > { %p922_p12 = pnand %p928_p0, %p1892_p13 }
 0x2f1   : > { %1279 = dma.done.wait (!%p922_p12), %s648_s29, 128  }
 0x2f2   : > { %1281 = vsyncadd (!%p922_p12), %s648_s29, 4294967168  ;;  %s27_s28 = sadd.s32 1, %s1324_s28   ;;  %s1893_s18 = sld [smem:[#allocation18_spill]] }
 0x2f3   : > { %p24_p5 = scmp.ge.s32.totalorder %s27_s28, 6   ;;  %s1894_s6 = sld [smem:[#allocation20_spill]] }
 0x2f4   : > { %s1895_s23 = sld [smem:[#allocation29_spill]]  ;;  %s1896_s25 = sld [smem:[#allocation23_spill]] }
 0x2f5   : > { %s1897_s10 = sld [smem:[#allocation27_spill]]  ;;  %s1898_s27 = sld [smem:[#allocation28_spill]] }
 0x2f6   : > { %s1899_s19 = smov %s1292_s20  ;;  %s1900_s20 = smov %s1572_s8 }
 0x2f7   : > { %s1901_s21 = smov %s1300_s22  ;;  %s1903_s24 = smov %s1316_s26 }
 0x2f8   :  { %26 = sbr.rel (!%p24_p5) target bundleno = 17 (0x11), region = 134 }
 0x2f9   : > { %s1902_s22 = smov %s1894_s6 }
 0x2fb   : > { %s1904_s26 = smov %s1897_s10 }
 0x2ff   :  { %653 = vsyncpa [#allocation4], 1 }
 0x300   :  { %655 = vsyncpa [#allocation4 + $0x1], 1 }
 0x301   :  { %656 = vsyncpa [#allocation7], 1 }
 0x302   :  { %658 = vsyncpa [#allocation7 + $0x1], 1 }
 0x303   :  { %659 = vsyncpa [#allocation10], 1 }
 0x304   :  { %661 = vsyncpa [#allocation10 + $0x1], 1 }
 0x305   :  { %662 = vsyncpa [#allocation5], 1 }
 0x306   :  { %664 = vsyncpa [#allocation5 + $0x1], 1 }

</bundles_post_ra>
